<compile_context>
chip_gen: v7x
topology: tpu7x:2x2x1
jax: 0.10.0
libtpu: 0.0.40
codegen_flags: <defaults>
</compile_context>

<pallas_src>
import jax
import jax.numpy as jnp
from jax.experimental import pallas as pl
from jax.experimental.pallas import tpu as pltpu

ALPHA = 0.5            # tanh-residual strength (|ALPHA| < 1 keeps it invertible)
_MAX_UNROLL_K = 32     # static-unroll + running-product path up to this many transforms
_MAX_CHUNK_ROWS = 64   # rows per register-resident chunk inside the kernel


def _round_up(v, m):
    return -(-v // m) * m


def _pick_chunk(rows, max_chunk):
    """Largest multiple-of-8 divisor of `rows` that is <= max_chunk."""
    best = 8
    d = 8
    while d <= min(rows, max_chunk):
        if rows % d == 0:
            best = d
        d += 8
    return best


def composite_kernel(x_ref, scale_ref, shift_ref, out_ref, lad_ref):
    """Cascade of K (affine -> tanh-residual) transforms over one batch tile.

    x_ref:      (TB, D)  input tile
    scale_ref:  (K, D)   per-transform scales  (exp(logscale), precomputed)
    shift_ref:  (K, D)   per-transform shifts
    out_ref:    (TB, D)  transformed outputs
    lad_ref:    (TB, 1)  data-dependent log|det J| per sample (affine part added
                         by the wrapper)
    """
    TB, D = x_ref.shape
    K = scale_ref.shape[0]
    chunk = _pick_chunk(TB, _MAX_CHUNK_ROWS)   # trace-time constant
    n_chunks = TB // chunk

    if K <= _MAX_UNROLL_K:
        # Hoist the small (1, D) parameter rows out of the chunk loop.
        scales = [scale_ref[k, :][None, :] for k in range(K)]
        shifts = [shift_ref[k, :][None, :] for k in range(K)]

    def cascade(xc):
        """Run the full K-step cascade register-resident on one (chunk, D) block."""
        if K <= _MAX_UNROLL_K:
            # K tanh + 1 log per element: running product replaces per-step log1p.
            prod = jnp.ones_like(xc)
            for k in range(K):
                xc = xc * scales[k] + shifts[k]                 # elementwise affine
                th = jnp.tanh(xc)
                xc = xc + ALPHA * th                            # invertible tanh residual
                prod = prod * (1.0 + ALPHA * (1.0 - th * th))   # factor in (1, 1+|ALPHA|]
            terms = jnp.log(prod)                               # single EUP log for all K
        else:
            # Large K: bound code size with an in-kernel loop over the VMEM-resident
            # params and keep the numerically safe per-step log1p accumulation.
            def body(k, carry):
                xx, aa = carry
                xx = xx * scale_ref[pl.ds(k, 1), :] + shift_ref[pl.ds(k, 1), :]
                th = jnp.tanh(xx)
                xx = xx + ALPHA * th
                aa = aa + jnp.log1p(ALPHA * (1.0 - th * th))
                return xx, aa

            xc, terms = jax.lax.fori_loop(0, K, body, (xc, jnp.zeros_like(xc)))
        return xc, terms

    if n_chunks == 1:
        y, terms = cascade(x_ref[...].astype(jnp.float32))
        out_ref[...] = y.astype(out_ref.dtype)
        lad_ref[...] = jnp.sum(terms, axis=-1, keepdims=True)
    else:
        def do_chunk(c, carry):
            start = pl.multiple_of(c * chunk, 8)                # sublane-aligned
            xc = x_ref[pl.ds(start, chunk), :].astype(jnp.float32)
            y, terms = cascade(xc)
            out_ref[pl.ds(start, chunk), :] = y.astype(out_ref.dtype)
            lad_ref[pl.ds(start, chunk), :] = jnp.sum(terms, axis=-1, keepdims=True)
            return carry

        jax.lax.fori_loop(0, n_chunks, do_chunk, 0,
                          unroll=True if n_chunks <= 16 else False)


def composite_transform_forward(x, logscale, shift, *, tb=1024):
    """Forward of the composite flow: returns (outputs, total_logabsdet).

    tb: requested batch-tile rows (default 1024).  The effective tile is a
        multiple of 8, clamped so the parallel grid has >= 2 steps whenever the
        batch allows it (keeps both v7x TensorCores busy) and padded so any
        batch size works.
    """
    B, D = x.shape
    K, _ = logscale.shape

    # --- tile / padding selection -------------------------------------------
    B8 = _round_up(B, 8)
    tb_req = max(8, (min(tb, B8) // 8) * 8)
    if B8 >= 16:
        # Ensure grid >= 2 so dimension_semantics=("parallel",) can shard
        # across TensorCores on v7x; harmless extra grid step elsewhere.
        tb_eff = min(tb_req, _round_up(-(-B8 // 2), 8))
    else:
        tb_eff = tb_req
    Bp = _round_up(B, tb_eff)
    grid = Bp // tb_eff

    x_p = x if Bp == B else jnp.pad(x, ((0, Bp - B), (0, 0)))

    # --- batch-invariant precompute (hoisted out of the per-tile loop) -------
    scale = jnp.exp(logscale).astype(jnp.float32)            # (K, D)
    shift_f32 = shift.astype(jnp.float32)                    # (K, D)
    affine_lad = jnp.sum(logscale).astype(jnp.float32)       # scalar, added post-kernel

    cost = pl.CostEstimate(
        flops=int(Bp * D * (10 * K + 2)),
        transcendentals=int((K + 1) * Bp * D),
        bytes_accessed=int(4 * (2 * Bp * D + Bp + 2 * K * D)),
    )

    out, lad = pl.pallas_call(
        composite_kernel,
        out_shape=(
            jax.ShapeDtypeStruct((Bp, D), x.dtype),
            jax.ShapeDtypeStruct((Bp, 1), jnp.float32),
        ),
        grid_spec=pltpu.PrefetchScalarGridSpec(
            num_scalar_prefetch=0,
            grid=(grid,),
            in_specs=[
                pl.BlockSpec((tb_eff, D), lambda i: (i, 0)),   # x tile
                pl.BlockSpec((K, D), lambda i: (0, 0)),        # scale (resident)
                pl.BlockSpec((K, D), lambda i: (0, 0)),        # shift (resident)
            ],
            out_specs=[
                pl.BlockSpec((tb_eff, D), lambda i: (i, 0)),
                pl.BlockSpec((tb_eff, 1), lambda i: (i, 0)),
            ],
        ),
        compiler_params=pltpu.CompilerParams(
            dimension_semantics=("parallel",),
            vmem_limit_bytes=32 * 1024 * 1024,
        ),
        cost_estimate=cost,
    )(x_p, scale, shift_f32)

    # Batch-invariant affine contribution folded in here (dropped (1,1) input).
    return out[:B], lad[:B, 0] + affine_lad


def reference_forward(x, logscale, shift):
    """Pure-JAX mirror of CompositeTransform._cascade for the same transforms."""
    lad = jnp.zeros((x.shape[0],), jnp.float32)
    for k in range(logscale.shape[0]):
        x = x * jnp.exp(logscale[k]) + shift[k]
        lad = lad + jnp.sum(logscale[k])
        th = jnp.tanh(x)
        x = x + ALPHA * th
        lad = lad + jnp.sum(jnp.log1p(ALPHA * (1.0 - th * th)), axis=-1)
    return x, lad


if __name__ == "__main__":
    K, D = 3, 128

    key = jax.random.PRNGKey(0)
    kx, ks, kt, kb = jax.random.split(key, 4)

    # Deterministic small parameters for the K affine sub-transforms.
    logscale = 0.1 * jax.random.normal(ks, (K, D), dtype=jnp.float32)
    shift = 0.1 * jax.random.normal(kt, (K, D), dtype=jnp.float32)

    # Small shape (matches the module's (batch, features) interface).
    x_small = jax.random.normal(kx, (16, D), dtype=jnp.float32)
    out_s, lad_s = composite_transform_forward(x_small, logscale, shift)
    jax.block_until_ready((out_s, lad_s))
    out_ref_s, lad_ref_s = reference_forward(x_small, logscale, shift)
    assert out_s.shape == (16, D) and lad_s.shape == (16,)
    assert jnp.allclose(out_s, out_ref_s, atol=1e-4, rtol=1e-4)
    assert jnp.allclose(lad_s, lad_ref_s, atol=1e-3, rtol=1e-4)

    # Larger, non-divisible batch: exercises the 2-step parallel grid, the
    # in-kernel chunk loop, and the pad/strip path.
    x_big = jax.random.normal(kb, (1000, D), dtype=jnp.float32)
    out_b, lad_b = composite_transform_forward(x_big, logscale, shift)
    jax.block_until_ready((out_b, lad_b))
    out_ref_b, lad_ref_b = reference_forward(x_big, logscale, shift)
    assert out_b.shape == (1000, D) and lad_b.shape == (1000,)
    assert jnp.allclose(out_b, out_ref_b, atol=1e-4, rtol=1e-4)
    assert jnp.allclose(lad_b, lad_ref_b, atol=1e-3, rtol=1e-4)

    print("KERNEL_OK")
</pallas_src>

<mosaic_0001>
module attributes {stable_mosaic.version = 11 : i64} {
  func.func @composite_kernel(%arg0: i32, %arg1: memref<8x128xf32, #tpu.memory_space<vmem>>, %arg2: memref<3x128xf32, #tpu.memory_space<vmem>>, %arg3: memref<3x128xf32, #tpu.memory_space<vmem>>, %arg4: memref<8x128xf32, #tpu.memory_space<vmem>>, %arg5: memref<8x1xf32, #tpu.memory_space<vmem>>) attributes {dimension_semantics = [#tpu.dimension_semantics<parallel>], iteration_bounds = array<i64: 2>, scalar_prefetch = 0 : i64, scratch_operands = 0 : i64, tpu.core_type = #tpu.core_type<tc>, window_params = [{transform_indices = @transform_0, window_bounds = array<i64: 8, 128>}, {pipeline_mode = #tpu.pipeline_mode<synchronous>, transform_indices = @transform_1, window_bounds = array<i64: 3, 128>}, {pipeline_mode = #tpu.pipeline_mode<synchronous>, transform_indices = @transform_2, window_bounds = array<i64: 3, 128>}, {transform_indices = @transform_3, window_bounds = array<i64: 8, 128>}, {transform_indices = @transform_4, window_bounds = array<i64: 8, 1>}]} {
    %c0 = arith.constant 0 : index
    %c0_0 = arith.constant 0 : index
    %0 = vector.load %arg2[%c0, %c0_0] : memref<3x128xf32, #tpu.memory_space<vmem>>, vector<1x128xf32>
    %1 = vector.shape_cast %0 : vector<1x128xf32> to vector<128xf32>
    %2 = vector.shape_cast %1 : vector<128xf32> to vector<1x128xf32>
    %c1 = arith.constant 1 : index
    %c0_1 = arith.constant 0 : index
    %3 = vector.load %arg2[%c1, %c0_1] : memref<3x128xf32, #tpu.memory_space<vmem>>, vector<1x128xf32>
    %4 = vector.shape_cast %3 : vector<1x128xf32> to vector<128xf32>
    %5 = vector.shape_cast %4 : vector<128xf32> to vector<1x128xf32>
    %c2 = arith.constant 2 : index
    %c0_2 = arith.constant 0 : index
    %6 = vector.load %arg2[%c2, %c0_2] : memref<3x128xf32, #tpu.memory_space<vmem>>, vector<1x128xf32>
    %7 = vector.shape_cast %6 : vector<1x128xf32> to vector<128xf32>
    %8 = vector.shape_cast %7 : vector<128xf32> to vector<1x128xf32>
    %c0_3 = arith.constant 0 : index
    %c0_4 = arith.constant 0 : index
    %9 = vector.load %arg3[%c0_3, %c0_4] : memref<3x128xf32, #tpu.memory_space<vmem>>, vector<1x128xf32>
    %10 = vector.shape_cast %9 : vector<1x128xf32> to vector<128xf32>
    %11 = vector.shape_cast %10 : vector<128xf32> to vector<1x128xf32>
    %c1_5 = arith.constant 1 : index
    %c0_6 = arith.constant 0 : index
    %12 = vector.load %arg3[%c1_5, %c0_6] : memref<3x128xf32, #tpu.memory_space<vmem>>, vector<1x128xf32>
    %13 = vector.shape_cast %12 : vector<1x128xf32> to vector<128xf32>
    %14 = vector.shape_cast %13 : vector<128xf32> to vector<1x128xf32>
    %c2_7 = arith.constant 2 : index
    %c0_8 = arith.constant 0 : index
    %15 = vector.load %arg3[%c2_7, %c0_8] : memref<3x128xf32, #tpu.memory_space<vmem>>, vector<1x128xf32>
    %16 = vector.shape_cast %15 : vector<1x128xf32> to vector<128xf32>
    %17 = vector.shape_cast %16 : vector<128xf32> to vector<1x128xf32>
    %c0_9 = arith.constant 0 : index
    %c0_10 = arith.constant 0 : index
    %18 = vector.load %arg1[%c0_9, %c0_10] : memref<8x128xf32, #tpu.memory_space<vmem>>, vector<8x128xf32>
    %cst = arith.constant 1.000000e+00 : f32
    %19 = vector.broadcast %cst : f32 to vector<8x128xf32>
    %20 = vector.broadcast %2 : vector<1x128xf32> to vector<8x128xf32>
    %21 = arith.mulf %18, %20 : vector<8x128xf32>
    %22 = vector.broadcast %11 : vector<1x128xf32> to vector<8x128xf32>
    %23 = arith.addf %21, %22 : vector<8x128xf32>
    %24 = math.tanh %23 : vector<8x128xf32>
    %cst_11 = arith.constant 5.000000e-01 : f32
    %25 = vector.broadcast %cst_11 : f32 to vector<8x128xf32>
    %26 = arith.mulf %25, %24 : vector<8x128xf32>
    %27 = arith.addf %23, %26 : vector<8x128xf32>
    %28 = arith.mulf %24, %24 : vector<8x128xf32>
    %cst_12 = arith.constant 1.000000e+00 : f32
    %29 = vector.broadcast %cst_12 : f32 to vector<8x128xf32>
    %30 = arith.subf %29, %28 : vector<8x128xf32>
    %cst_13 = arith.constant 5.000000e-01 : f32
    %31 = vector.broadcast %cst_13 : f32 to vector<8x128xf32>
    %32 = arith.mulf %31, %30 : vector<8x128xf32>
    %cst_14 = arith.constant 1.000000e+00 : f32
    %33 = vector.broadcast %cst_14 : f32 to vector<8x128xf32>
    %34 = arith.addf %33, %32 : vector<8x128xf32>
    %35 = arith.mulf %19, %34 : vector<8x128xf32>
    %36 = vector.broadcast %5 : vector<1x128xf32> to vector<8x128xf32>
    %37 = arith.mulf %27, %36 : vector<8x128xf32>
    %38 = vector.broadcast %14 : vector<1x128xf32> to vector<8x128xf32>
    %39 = arith.addf %37, %38 : vector<8x128xf32>
    %40 = math.tanh %39 : vector<8x128xf32>
    %cst_15 = arith.constant 5.000000e-01 : f32
    %41 = vector.broadcast %cst_15 : f32 to vector<8x128xf32>
    %42 = arith.mulf %41, %40 : vector<8x128xf32>
    %43 = arith.addf %39, %42 : vector<8x128xf32>
    %44 = arith.mulf %40, %40 : vector<8x128xf32>
    %cst_16 = arith.constant 1.000000e+00 : f32
    %45 = vector.broadcast %cst_16 : f32 to vector<8x128xf32>
    %46 = arith.subf %45, %44 : vector<8x128xf32>
    %cst_17 = arith.constant 5.000000e-01 : f32
    %47 = vector.broadcast %cst_17 : f32 to vector<8x128xf32>
    %48 = arith.mulf %47, %46 : vector<8x128xf32>
    %cst_18 = arith.constant 1.000000e+00 : f32
    %49 = vector.broadcast %cst_18 : f32 to vector<8x128xf32>
    %50 = arith.addf %49, %48 : vector<8x128xf32>
    %51 = arith.mulf %35, %50 : vector<8x128xf32>
    %52 = vector.broadcast %8 : vector<1x128xf32> to vector<8x128xf32>
    %53 = arith.mulf %43, %52 : vector<8x128xf32>
    %54 = vector.broadcast %17 : vector<1x128xf32> to vector<8x128xf32>
    %55 = arith.addf %53, %54 : vector<8x128xf32>
    %56 = math.tanh %55 : vector<8x128xf32>
    %cst_19 = arith.constant 5.000000e-01 : f32
    %57 = vector.broadcast %cst_19 : f32 to vector<8x128xf32>
    %58 = arith.mulf %57, %56 : vector<8x128xf32>
    %59 = arith.addf %55, %58 : vector<8x128xf32>
    %60 = arith.mulf %56, %56 : vector<8x128xf32>
    %cst_20 = arith.constant 1.000000e+00 : f32
    %61 = vector.broadcast %cst_20 : f32 to vector<8x128xf32>
    %62 = arith.subf %61, %60 : vector<8x128xf32>
    %cst_21 = arith.constant 5.000000e-01 : f32
    %63 = vector.broadcast %cst_21 : f32 to vector<8x128xf32>
    %64 = arith.mulf %63, %62 : vector<8x128xf32>
    %cst_22 = arith.constant 1.000000e+00 : f32
    %65 = vector.broadcast %cst_22 : f32 to vector<8x128xf32>
    %66 = arith.addf %65, %64 : vector<8x128xf32>
    %67 = arith.mulf %51, %66 : vector<8x128xf32>
    %68 = math.log %67 : vector<8x128xf32>
    %c0_23 = arith.constant 0 : index
    %c0_24 = arith.constant 0 : index
    %69 = vector.load %arg4[%c0_23, %c0_24] : memref<8x128xf32, #tpu.memory_space<vmem>>, vector<8x128xf32>
    tpu.vector_store %arg4[%c0_23, %c0_24], %59 {strides = array<i32>} : memref<8x128xf32, #tpu.memory_space<vmem>>, vector<8x128xf32>,
    %cst_25 = arith.constant dense<0.000000e+00> : vector<8xf32>
    %70 = vector.multi_reduction <add>, %68, %cst_25 [1] : vector<8x128xf32> to vector<8xf32>
    %71 = vector.shape_cast %70 : vector<8xf32> to vector<8x1xf32>
    %c0_26 = arith.constant 0 : index
    %c0_27 = arith.constant 0 : index
    %72 = vector.load %arg5[%c0_26, %c0_27] : memref<8x1xf32, #tpu.memory_space<vmem>>, vector<8x1xf32>
    tpu.vector_store %arg5[%c0_26, %c0_27], %71 {strides = array<i32>} : memref<8x1xf32, #tpu.memory_space<vmem>>, vector<8x1xf32>,
    return
  }
  func.func @transform_0(%arg0: i32) -> (i32, i32) {
    %c0_i32 = arith.constant 0 : i32
    %c0_i32_0 = arith.constant 0 : i32
    return %arg0, %c0_i32 : i32, i32
  }
  func.func @transform_1(%arg0: i32) -> (i32, i32) {
    %c0_i32 = arith.constant 0 : i32
    %c0_i32_0 = arith.constant 0 : i32
    %c0_i32_1 = arith.constant 0 : i32
    return %c0_i32, %c0_i32_0 : i32, i32
  }
  func.func @transform_2(%arg0: i32) -> (i32, i32) {
    %c0_i32 = arith.constant 0 : i32
    %c0_i32_0 = arith.constant 0 : i32
    %c0_i32_1 = arith.constant 0 : i32
    return %c0_i32, %c0_i32_0 : i32, i32
  }
  func.func @transform_3(%arg0: i32) -> (i32, i32) {
    %c0_i32 = arith.constant 0 : i32
    %c0_i32_0 = arith.constant 0 : i32
    return %arg0, %c0_i32 : i32, i32
  }
  func.func @transform_4(%arg0: i32) -> (i32, i32) {
    %c0_i32 = arith.constant 0 : i32
    %c0_i32_0 = arith.constant 0 : i32
    return %arg0, %c0_i32 : i32, i32
  }
}

</mosaic_0001>

<bundles_post_ra>
// kernel: tpu_custom_call.1
= control target key start
LH: loop header
LB: loop body
LE: loop exit
PB: predicated region body
PF: predicated region fallthrough
CT: control target
= control target key end

     0   :  { %10 = vsyncpa [#allocation3], 0  ;;  %s886_s0 = inlined_call_operand.hbm [shape: f32[16,128], index: 0, kind: input, shape index: {}]   ;;  %s887_s1 = inlined_call_operand.hbm [shape: f32[3,128], index: 1, kind: input, shape index: {}]   ;;  %s888_s2 = inlined_call_operand.vmem [shape: f32[3,128], index: 2, kind: input, shape index: {}]   ;;  %s889_s3 = inlined_call_operand.hbm [shape: f32[16,128], index: 3, kind: output, shape index: {0}]   ;;  %s890_s4 = inlined_call_operand.vmem [shape: f32[16,1], index: 4, kind: output, shape index: {1}]  }
   0x1   :  { %12 = vsyncpa [#allocation3 + $0x1], 0 }
   0x2   :  { %13 = vsyncpa [#allocation6], 0 }
   0x3   :  { %14 = vsyncpa [#allocation4], 0 }
   0x4   :  { %16 = vsyncpa [#allocation4 + $0x1], 0  ;;  %s673_s15 = smov 0   ;;  %s675_s16 = smov 0  }
   0x5   :  { %s677_s17 = smov 0   ;;  %s679_s18 = smov 0  }
   0x6 LB: > { %s694_s19 = sadd.s32 4294967295, %s643_s18   ;;  %s429_s20 = sadd.s32 4294967294, %s643_s18   ;;  %s643_s18 = sphi %s679_s18, %s914_s18   ;;  %s639_s17 = sphi %s677_s17, %s913_s17   ;;  %s635_s16 = sphi %s675_s16, %s912_s16   ;;  %s631_s15 = sphi %s673_s15, %s911_s15  }
   0x7   : > { %p42_p0 = scmp.ne.s32.totalorder %s635_s16, %s631_s15  ;;  %p891_p1 = scmp.eq.s32.totalorder %s694_s19, 0 }
   0x8   : > { %p114_p3 = scmp.eq.s32.totalorder %s429_s20, 1  ;;  %p430_p5 = scmp.ge.s32.totalorder %s643_s18, 1 }
   0x9   : > { %p703_p4 = por %p891_p1, %p42_p0  ;;  %p147_p7 = scmp.lt.s32.totalorder %s643_s18, 3 }
   0xa   : > { %p708_p6 = por %p114_p3, %p42_p0  ;;  %s645_s24 = smov [#allocation5]  }
   0xb   : > { %s894_s21 = scalar_select %p703_p4, 1, 0 }
   0xc   : > { %s895_s22 = scalar_select %p708_p6, 1, 0 }
   0xd   : > { %p713_p8 = pnand %p430_p5, %p147_p7  ;;  %s160_s25 = sshll.u32 %s645_s24, 4  ;;  %s161_s25 = int_to_ptr.vmem [resolvable:$true] %s160_s25 }
   0xe   : > { %s721_s26 = sadd.s32 1, %s643_s18   ;;  %s29_s30 = sadd.s32 1, %s639_s17 }
   0xf   : > { %s896_s23 = scalar_select %p713_p8, 1, 0 }
  0x10   : > { %p458_p10 = pneg %p713_p8  ;;  %s26_s28 = ssub.s32 %s643_s18, %s721_s26 }
  0x11   : > { %p731_p12 = scmp.eq.s32.totalorder %s26_s28, 0  ;;  %s515_s7 = scalar_lea.hbm %s887_s1, 64 }
  0x12   : > { %p725_p11 = pnand %p458_p10, %p891_p1  ;;  %p516_p0 = scmp.ne.s32.totalorder %s887_s1, %s515_s7 }
  0x13   : > { %s898_s29 = scalar_select %p731_p12, 1, 0 }
  0x14   : > { %p517_p3 = pneg %p725_p11  ;;  %p522_p10 = scmp.lt.u32.totalorder %s515_s7, %s887_s1 }
  0x16   : > { %p518_p5 = pnand %p517_p3, %p516_p0 }
  0x18   : > { %p519_p7 = pneg %p518_p5 }
  0x1a   : > { %p524_p9 = pnand %p522_p10, %p519_p7 }
  0x1c   : > { %527 = shalt.err (!%p524_p9)
}
  0x1d   : > { %s528_s12 = scalar_lea.vmem %s161_s25, 64  ;;  %p536_p6 = scmp.lt.s32.totalorder %s161_s25, %s161_s25 }
  0x1e   : > { %p529_p1 = scmp.ne.s32.totalorder %s161_s25, %s528_s12  ;;  %p537_p4 = scmp.lt.s32.totalorder %s528_s12, %s528_s12 }
  0x20   : > { %p531_p2 = pnand %p529_p1, %p517_p3  ;;  %p538_p8 = por %p537_p4, %p536_p6 }
  0x22   : > { %p532_p13 = pneg %p531_p2 }
  0x24   : > { %p539_p12 = pnand %p538_p8, %p532_p13 }
  0x26   : > { %542 = shalt.err (!%p539_p12)
}
  0x27   : > { %461 = dma.hbm_to_vmem [thread:$0]  (!%p725_p11), %s887_s1, 64, %s161_s25, [#allocation6]  }
  0x28   : > { %p899_p1 = scmp.ne.s32.totalorder %s898_s29, 0  ;;  %p37_p2 = scmp.eq.s32.totalorder %s643_s18, 0 }
  0x29   : > { %p900_p4 = scmp.ne.s32.totalorder %s639_s17, %s635_s16  ;;  %p901_p6 = scmp.eq.s32.totalorder %s694_s19, 1 }
  0x2a   : > { %s757_s20 = scalar_select %p899_p1, %s639_s17, %s29_s30  }
  0x2b   : > { %p765_p8 = por %p901_p6, %p900_p4  ;;  %p471_p9 = scmp.lt.s32.totalorder %s643_s18, 2 }
  0x2c   : > { %s174_s27 = sand.u32 1, %s639_s17   ;;  %p903_p12 = pmov %p900_p4 }
  0x2d   : > { %s433_s28 = sshll.u32 %s174_s27, 3  ;;  %s434_s5 = sshll.u32 %s643_s18, 7 }
  0x2e   : > { %p38_p13 = por %p37_p2, %p903_p12  ;;  %s778_s25 = scalar_lea.hbm %s886_s0, %s434_s5 }
  0x2f   : > { %s178_s29 = scalar_lea.vmem [#allocation2], %s433_s28  ;;  %s175_s9 = scalar_lea.sflag [#allocation3], %s174_s27 }
  0x30   : > { %s185_s30 = sshll.u32 %s178_s29, 4  ;;  %p780_p11 = pnand %p471_p9, %p38_p13  ;;  %s784_s30 = int_to_ptr.vmem [resolvable:$true] %s185_s30 }
  0x31   : > { %s543_s10 = scalar_lea.hbm %s778_s25, 128  ;;  %s548_s13 = scalar_lea.hbm %s886_s0, 256 }
  0x32   : > { %p544_p0 = scmp.ne.s32.totalorder %s778_s25, %s543_s10  ;;  %p545_p3 = pneg %p780_p11 }
  0x33   : > { %p549_p10 = scmp.lt.u32.totalorder %s778_s25, %s886_s0  ;;  %p550_p1 = scmp.lt.u32.totalorder %s548_s13, %s543_s10 }
  0x34   : > { %p546_p5 = pnand %p545_p3, %p544_p0  ;;  %p552_p4 = scmp.lt.u32.totalorder %s543_s10, %s778_s25 }
  0x35   : > { %p551_p2 = por %p550_p1, %p549_p10 }
  0x36   : > { %p547_p7 = pneg %p546_p5 }
  0x37   : > { %p553_p6 = por %p552_p4, %p551_p2 }
  0x39   : > { %p554_p9 = pnand %p553_p6, %p547_p7 }
  0x3b   : > { %557 = shalt.err (!%p554_p9)
}
  0x3c   : > { %s558_s27 = scalar_lea.vmem %s784_s30, 128  ;;  %s646_s5 = smov [#allocation2]  }
  0x3d   : > { %p559_p12 = scmp.ne.s32.totalorder %s784_s30, %s558_s27  ;;  %s563_s6 = sshll.u32 %s646_s5, 4  ;;  %s564_s6 = int_to_ptr.vmem [resolvable:$false] %s563_s6 }
  0x3e   : > { %s565_s7 = scalar_lea.vmem %s564_s6, 256  ;;  %p566_p5 = scmp.lt.s32.totalorder %s784_s30, %s564_s6 }
  0x3f   : > { %p561_p13 = pnand %p559_p12, %p545_p3  ;;  %p567_p10 = scmp.lt.s32.totalorder %s565_s7, %s558_s27 }
  0x41   : > { %p562_p0 = pneg %p561_p13  ;;  %p568_p1 = por %p567_p10, %p566_p5 }
  0x43   : > { %p569_p2 = pnand %p568_p1, %p562_p0 }
  0x45   : > { %572 = shalt.err (!%p569_p2)
}
  0x46   : > { %465 = dma.hbm_to_vmem [thread:$0]  (!%p780_p11), %s778_s25, 128, %s784_s30, %s175_s9  }
  0x47   : > { %p905_p7 = scmp.ne.s32.totalorder %s896_s23, 0 }
  0x48   : > { %s814_s29 = sand.u32 (!%p905_p7), 1, %s635_s16   ;;  %p906_p3 = scmp.ne.s32.totalorder (!%p905_p7), %s894_s21, 0 }
  0x49   : > { %194 = sbr.rel (%p905_p7) target bundleno = 304 (0x130), region = 32  ;;  %s436_s10 = sshll.u32 (!%p905_p7), %s814_s29, 3 }
  0x4a   : > { %s197_s11 = scalar_lea.sflag (!%p905_p7), [#allocation3], %s814_s29  ;;  %s200_s12 = scalar_lea.vmem (!%p905_p7), [#allocation2], %s436_s10 }
  0x50   : > { %618 = dma.done.wait (%p906_p3), %s197_s11, 128  }
  0x51   : > { %620 = vsyncadd (%p906_p3), %s197_s11, 4294967168  ;;  %p907_p11 = scmp.eq.s32.totalorder %s694_s19, 0 }
  0x53   : > { %622 = dma.done.wait (%p907_p11), [#allocation6], 64   ;;  %p908_p4 = pmov %p907_p11 }
  0x54   : > { %v440_v0 = vld [vmem:[#allocation5] ss:$0 sm:$0xff]  ;;  %v243_v2 = vld [vmem:[%s200_s12] sm:$0xff]  ;;  %v442_v7 = vld [vmem:[#allocation5 + $0x1] ss:$0 sm:$0xff]  ;;  %s447_s13 = sshll.u32 %s694_s19, 7 }
  0x55   : > { %624 = vsyncadd (%p908_p4), [#allocation6], 4294967232  ;;  %v441_v1 = vld [vmem:[%s888_s2] ss:$0 sm:$0xff]  ;;  %v248_v3 = vmul.f32 %v440_v0, %v243_v2  ;;  %v443_v9 = vld [vmem:[%s888_s2 + $0x1] ss:$0 sm:$0xff]  ;;  %s843_s6 = scalar_lea.hbm %s889_s3, %s447_s13 }
  0x56   : > { %v444_v14 = vld [vmem:[#allocation5 + $0x2] ss:$0 sm:$0xff]  ;;  %s226_s14 = scalar_lea.vmem [#allocation7], %s436_s10  ;;  %s305_s7 = scalar_lea.sflag [#allocation4], %s814_s29 }
  0x57   : > { %v253_v4 = vadd.f32 %v441_v1, %v248_v3  ;;  %v445_v16 = vld [vmem:[%s888_s2 + $0x2] ss:$0 sm:$0xff]  ;;  %s322_s28 = sshll.u32 %s226_s14, 4  ;;  %s647_s12 = smov [#allocation7]   ;;  %s323_s28 = int_to_ptr.vmem [resolvable:$true] %s322_s28 }
  0x58   : > { %s573_s11 = scalar_lea.vmem %s323_s28, 128  ;;  %s577_s23 = sshll.u32 %s647_s12, 4  ;;  %s578_s23 = int_to_ptr.vmem [resolvable:$false] %s577_s23 }
  0x59   : > { %507 = vtanh.f32 %v253_v4  ;;  %p574_p6 = scmp.ne.s32.totalorder %s323_s28, %s573_s11  ;;  %s579_s25 = scalar_lea.vmem %s578_s23, 256 }
  0x5a   : > { %p580_p13 = scmp.lt.s32.totalorder %s323_s28, %s578_s23  ;;  %p581_p0 = scmp.lt.s32.totalorder %s579_s25, %s573_s11 }
  0x5b   : > { %p575_p9 = pnand %p574_p6, %p765_p8 }
  0x5c   : > { %p582_p5 = por %p581_p0, %p580_p13 }
  0x5d   : > { %p576_p12 = pneg %p575_p9 }
  0x5f   : > { %p583_p10 = pnand %p582_p5, %p576_p12 }
  0x63   : > { %v508_v5 = vpop.eup %507 }
  0x64   : > { %v255_v6 = vmul.f32 0.5, %v508_v5  ;;  %v257_v19 = vmul.f32 %v508_v5, %v508_v5 }
  0x66   : > { %v256_v8 = vadd.f32 %v255_v6, %v253_v4  ;;  %v258_v21 = vsub.f32 1.0, %v257_v19 }
  0x68   : > { %v265_v10 = vmul.f32 %v442_v7, %v256_v8  ;;  %v259_v23 = vmul.f32 0.5, %v258_v21 }
  0x6a   : > { %v270_v11 = vadd.f32 %v443_v9, %v265_v10  ;;  %v260_v26 = vadd.f32 1.0, %v259_v23 }
  0x6c   : > { %509 = vtanh.f32 %v270_v11 }
  0x76   : > { %v510_v12 = vpop.eup %509 }
  0x77   : > { %v272_v13 = vmul.f32 0.5, %v510_v12  ;;  %v274_v20 = vmul.f32 %v510_v12, %v510_v12 }
  0x79   : > { %v273_v15 = vadd.f32 %v272_v13, %v270_v11  ;;  %v275_v22 = vsub.f32 1.0, %v274_v20 }
  0x7b   : > { %v283_v17 = vmul.f32 %v444_v14, %v273_v15  ;;  %v276_v24 = vmul.f32 0.5, %v275_v22 }
  0x7d   : > { %v288_v18 = vadd.f32 %v445_v16, %v283_v17  ;;  %v277_v27 = vadd.f32 1.0, %v276_v24 }
  0x7f   : > { %511 = vtanh.f32 %v288_v18  ;;  %v278_v30 = vmul.f32 %v277_v27, %v260_v26 }
  0x89   : > { %v512_v25 = vpop.eup %511 }
  0x8a   : > { %v292_v28 = vmul.f32 %v512_v25, %v512_v25  ;;  %v290_v36 = vmul.f32 0.5, %v512_v25 }
  0x8c   : > { %v293_v29 = vsub.f32 1.0, %v292_v28  ;;  %v291_v37 = vadd.f32 %v290_v36, %v288_v18 }
  0x8e   : > { %v294_v31 = vmul.f32 0.5, %v293_v29  ;;  %299 = vst [vmem:[%s226_s14] sm:$0xff] %v291_v37 }
  0x90   : > { %v295_v32 = vadd.f32 1.0, %v294_v31 }
  0x92   : > { %v296_v33 = vmul.f32 %v295_v32, %v278_v30 }
  0x94   : > { %513 = vlog2.f32 %v296_v33 }
  0x9e   : > { %v514_v34 = vpop.eup %513 }
  0x9f   : > { %v298_v35 = vmul.f32 0.6931472, %v514_v34 }
  0xa1   : > { %300 = vadd.xlane.f32.xlu0 %v298_v35 }
  0xa2   : > { %586 = shalt.err (!%p583_p10)
}
  0xa3   : > { %s587_s29 = scalar_lea.hbm %s843_s6, 128  ;;  %s591_s30 = scalar_lea.hbm %s889_s3, 256 }
  0xa4   : > { %p588_p1 = scmp.ne.s32.totalorder %s843_s6, %s587_s29  ;;  %p592_p3 = scmp.lt.u32.totalorder %s843_s6, %s889_s3 }
  0xa5   : > { %p593_p11 = scmp.lt.u32.totalorder %s591_s30, %s587_s29  ;;  %p595_p6 = scmp.lt.u32.totalorder %s587_s29, %s843_s6 }
  0xa6   : > { %p589_p2 = pnand %p588_p1, %p765_p8 }
  0xa7   : > { %p594_p4 = por %p593_p11, %p592_p3 }
  0xa8   : > { %p590_p7 = pneg %p589_p2 }
  0xa9   : > { %p596_p9 = por %p595_p6, %p594_p4 }
  0xab   : > { %p597_p12 = pnand %p596_p9, %p590_p7 }
  0xad   : > { %600 = shalt.err (!%p597_p12)
}
  0xae   : > { %456 = dma.vmem_to_hbm [thread:$0]  (%p765_p8), %s323_s28, 128, %s843_s6, %s305_s7   ;;  %vm302_vm0 = vcmask 7168  }
  0xaf   : > { %p233_p13 = scmp.lt.s32.totalorder %s694_s19, 1 }
  0xb1   : > { %s916_s19 = smov (!%p233_p13, %s694_s19), 1 }
  0xb2   : > { %s439_s13 = sshll.u32 %s916_s19, 3 }
  0xb3   : > { %s236_s5 = scalar_lea.vmem %s890_s4, %s439_s13 }
 0x12e   : > { %v301_v38 = vpop.xlane.xlu0 %300 }
 0x12f   : > { %303 = vst.msk [vmem:[%s236_s5] sm:$0xff] %vm302_vm0, %v301_v38 }
 0x130 PF: > { %s337_s11 = sand.u32 1, %s631_s15   ;;  %p909_p0 = scmp.ne.s32.totalorder %s895_s22, 0 }
 0x131   : > { %p910_p5 = scmp.ge.s32.totalorder %s643_s18, 2  ;;  %s338_s24 = scalar_lea.sflag [#allocation4], %s337_s11 }
 0x133   : > { %p467_p10 = pnand %p910_p5, %p909_p0 }
 0x135   : > { %626 = dma.done.wait (!%p467_p10), %s338_s24, 128  }
 0x136   : > { %628 = vsyncadd (!%p467_p10), %s338_s24, 4294967168  ;;  %p19_p8 = scmp.ge.s32.totalorder %s721_s26, 4   ;;  %s911_s15 = smov %s635_s16 }
 0x137   : > { %s912_s16 = smov %s639_s17  ;;  %s913_s17 = smov %s757_s20 }
 0x138   : > { %s914_s18 = smov %s721_s26  ;;  %21 = sbr.rel (!%p19_p8) target bundleno = 6 (0x6), region = 93 }
 0x13f   :  { %350 = vsyncpa [#allocation3], 1 }
 0x140   :  { %352 = vsyncpa [#allocation3 + $0x1], 1 }
 0x141   :  { %353 = vsyncpa [#allocation6], 1 }
 0x142   :  { %354 = vsyncpa [#allocation4], 1 }
 0x143   :  { %356 = vsyncpa [#allocation4 + $0x1], 1 }

</bundles_post_ra>
